<compile_context>
chip_gen: v7x
topology: tpu7x:2x2x1
jax: 0.10.0
libtpu: 0.0.40
codegen_flags: <defaults>
</compile_context>

<pallas_src>
import jax
import jax.numpy as jnp
from jax import lax
from jax.experimental import pallas as pl
from jax.experimental.pallas import tpu as pltpu

_VMEM_LIMIT_BYTES = 32 * 1024 * 1024   # safe scoped limit on v5e / v6e / v7x
_TILE_BUDGET_BYTES = 8 * 1024 * 1024   # in + out blocks (double-buffered) budget


# --------------------------------------------------------------------------
# Kernels
# --------------------------------------------------------------------------
def _bcast_copy_kernel(emb_ref, out_ref):
    # Whole-block copy; broadcasts over any leading (batch) dim of the output
    # block.  Identity broadcast when shapes match (flat path).
    out_ref[...] = jnp.broadcast_to(emb_ref[...], out_ref.shape)


def _make_fused_kernel(n_head, head_emb_sz):
    """Kernel for one (layer, k/v) slice: emb block (P, n_head*Dh) is split
    into per-head lane-aligned column slices and broadcast over the batch
    tile directly into the consumer (B_t, n_head, P, Dh) layout."""
    def kernel(emb_ref, out_ref):
        b_tile = out_ref.shape[0]
        for h in range(n_head):                       # static, unrolled
            col = emb_ref[:, h * head_emb_sz:(h + 1) * head_emb_sz]   # (P, Dh)
            out_ref[:, h, :, :] = jnp.broadcast_to(
                col[None, :, :], (b_tile,) + col.shape)
    return kernel


# --------------------------------------------------------------------------
# Tiling heuristics
# --------------------------------------------------------------------------
def _pick_tile_d(prefix_len, d_total, itemsize, budget_bytes=_TILE_BUDGET_BYTES):
    """Largest lane-aligned divisor of d_total whose in+out blocks (double
    buffered) fit the VMEM budget.  Falls back to the full dim when d_total is
    not 128-aligned (full-dim blocks are always legal)."""
    if d_total % 128 != 0:
        return d_total
    best = 128
    t = 128
    while t <= d_total:
        if d_total % t == 0 and 4 * prefix_len * t * itemsize <= budget_bytes:
            best = t
        t += 128
    return best


def _pick_fused_batch_tile(nbatch, step_bytes, budget_bytes=_TILE_BUDGET_BYTES):
    """Largest divisor b_tile of nbatch such that per-step VMEM use
    (2x buffered input + 2x buffered output + broadcast temp) fits the budget.
    Returns 0 if even b_tile == 1 does not fit (caller falls back)."""
    best = 0
    for bt in range(1, nbatch + 1):
        if nbatch % bt == 0 and (2 + 3 * bt) * step_bytes <= budget_bytes:
            best = bt
    return best


# --------------------------------------------------------------------------
# pallas_call wrappers
# --------------------------------------------------------------------------
def _pkv_fused(emb_weight, nbatch, *, n_layers, n_head, prefix_len,
               head_emb_sz, b_tile):
    """Emit past-KV directly as (n_layers*2, B, n_head, prefix_len, Dh)."""
    plm_hidden = n_head * head_emb_sz
    n_l2 = n_layers * 2
    d_total = emb_weight.shape[1]
    itemsize = jnp.dtype(emb_weight.dtype).itemsize
    bytes_accessed = (1 + nbatch) * prefix_len * d_total * itemsize

    out_shape = jax.ShapeDtypeStruct(
        (n_l2, nbatch, n_head, prefix_len, head_emb_sz), emb_weight.dtype)

    return pl.pallas_call(
        _make_fused_kernel(n_head, head_emb_sz),
        out_shape=out_shape,
        # batch innermost: the input block index depends only on l2, so the
        # table slice stays VMEM-resident across all batch tiles (read once).
        grid=(n_l2, nbatch // b_tile),
        in_specs=[
            # columns [l2*plm_hidden, (l2+1)*plm_hidden) of the table
            pl.BlockSpec((prefix_len, plm_hidden), lambda l2, b: (0, l2)),
        ],
        out_specs=pl.BlockSpec(
            (None, b_tile, n_head, prefix_len, head_emb_sz),
            lambda l2, b: (l2, b, 0, 0, 0),
        ),
        compiler_params=pltpu.CompilerParams(
            dimension_semantics=("parallel", "parallel"),
            vmem_limit_bytes=_VMEM_LIMIT_BYTES,
        ),
        cost_estimate=pl.CostEstimate(
            flops=0, transcendentals=0, bytes_accessed=bytes_accessed),
    )(emb_weight)


def _pkv_flat(emb_weight, nbatch):
    """(B, P, D) broadcast of the table with the D (lane) axis tiled."""
    prefix_len, d_total = emb_weight.shape
    itemsize = jnp.dtype(emb_weight.dtype).itemsize
    tile_d = _pick_tile_d(prefix_len, d_total, itemsize)
    n_d = d_total // tile_d
    bytes_accessed = (1 + nbatch) * prefix_len * d_total * itemsize

    return pl.pallas_call(
        _bcast_copy_kernel,
        out_shape=jax.ShapeDtypeStruct((nbatch, prefix_len, d_total),
                                       emb_weight.dtype),
        # D-tiles outer, batch innermost: the table tile's block index depends
        # only on d, so it stays VMEM-resident across the batch iterations.
        grid=(n_d, nbatch),
        in_specs=[pl.BlockSpec((prefix_len, tile_d), lambda d, b: (0, d))],
        out_specs=pl.BlockSpec((None, prefix_len, tile_d),
                               lambda d, b: (b, 0, d)),
        compiler_params=pltpu.CompilerParams(
            dimension_semantics=("parallel", "parallel"),
            vmem_limit_bytes=_VMEM_LIMIT_BYTES,
        ),
        cost_estimate=pl.CostEstimate(
            flops=0, transcendentals=0, bytes_accessed=bytes_accessed),
    )(emb_weight)


# --------------------------------------------------------------------------
# Public forward
# --------------------------------------------------------------------------
def ptuning_v2_prompt_forward(nbatch, emb_weight, *, prefix_len, n_layers,
                              n_head, plm_hidden):
    """Mirror of PTuningV2Prompt.forward (prefix_enc=None, dropout=None).

    emb_weight: (prefix_len, plm_hidden * n_layers * 2)  -- nn.Embedding weight
    Returns a tuple of n_layers arrays of shape (2, B, n_head, prefix_len, Dh).
    """
    # TODO(synk): optional prefix_encoder / dropout submodules (None in the
    # default construction) are not implemented.
    head_emb_sz = plm_hidden // n_head
    d_total = emb_weight.shape[1]
    assert d_total == plm_hidden * n_layers * 2
    itemsize = jnp.dtype(emb_weight.dtype).itemsize

    step_bytes = prefix_len * plm_hidden * itemsize
    b_tile = _pick_fused_batch_tile(nbatch, step_bytes)

    if head_emb_sz % 128 == 0 and b_tile > 0:
        # Kernel writes past-KV directly in the consumer layout; no
        # post-kernel transpose of the full tensor (saves ~2x B*P*D HBM).
        pkv = _pkv_fused(emb_weight, nbatch, n_layers=n_layers, n_head=n_head,
                         prefix_len=prefix_len, head_emb_sz=head_emb_sz,
                         b_tile=b_tile)
    else:
        # TODO(synk): lane-unaligned Dh (e.g. 64) could also be fused with
        # masked stores; kept on the flat + XLA-transpose path for safety.
        flat = _pkv_flat(emb_weight, nbatch)
        pkv = flat.reshape(nbatch, prefix_len, n_layers * 2, n_head, head_emb_sz)
        pkv = jnp.transpose(pkv, (2, 0, 3, 1, 4))

    # torch .split(2, dim=0) -> tuple of n_layers tensors (2, B, H, P, Dh).
    return tuple(
        lax.slice_in_dim(pkv, 2 * l, 2 * (l + 1), axis=0)
        for l in range(n_layers)
    )


def reference_forward(nbatch, emb_weight, *, prefix_len, n_layers, n_head,
                      plm_hidden):
    """Pure-JAX reference replicating the PyTorch semantics."""
    head_emb_sz = plm_hidden // n_head
    batch_tokens = jnp.broadcast_to(
        jnp.arange(prefix_len, dtype=jnp.int32)[None, :], (nbatch, prefix_len))
    embeddings = emb_weight[batch_tokens]  # (B, P, D)
    pkv = embeddings.reshape(nbatch, prefix_len, n_layers * 2, n_head, head_emb_sz)
    pkv = jnp.transpose(pkv, (2, 0, 3, 1, 4))
    return tuple(pkv[2 * l:2 * (l + 1)] for l in range(n_layers))


if __name__ == "__main__":
    key = jax.random.PRNGKey(0)

    configs = [
        # Dh = 8   -> exercises the flat (lane-dense slab + XLA transpose) path
        dict(prefix_len=8, n_layers=2, n_head=4, plm_hidden=32, nbatch=2),
        # Dh = 128 -> exercises the fused consumer-layout path (b_tile = 3)
        dict(prefix_len=8, n_layers=2, n_head=2, plm_hidden=256, nbatch=3),
    ]

    for i, cfg in enumerate(configs):
        d_total = cfg["plm_hidden"] * cfg["n_layers"] * 2
        k = jax.random.fold_in(key, i)
        emb_weight = jax.random.normal(
            k, (cfg["prefix_len"], d_total), dtype=jnp.float32)

        out = ptuning_v2_prompt_forward(
            cfg["nbatch"], emb_weight,
            prefix_len=cfg["prefix_len"], n_layers=cfg["n_layers"],
            n_head=cfg["n_head"], plm_hidden=cfg["plm_hidden"])
        out = jax.block_until_ready(out)

        ref = reference_forward(
            cfg["nbatch"], emb_weight,
            prefix_len=cfg["prefix_len"], n_layers=cfg["n_layers"],
            n_head=cfg["n_head"], plm_hidden=cfg["plm_hidden"])

        head_emb_sz = cfg["plm_hidden"] // cfg["n_head"]
        assert len(out) == cfg["n_layers"]
        for o, r in zip(out, ref):
            assert o.shape == (2, cfg["nbatch"], cfg["n_head"],
                               cfg["prefix_len"], head_emb_sz), o.shape
            assert jnp.allclose(o, r), "mismatch vs reference"

    print("KERNEL_OK")
</pallas_src>

<mosaic_0001>
module attributes {stable_mosaic.version = 11 : i64} {
  func.func @_bcast_copy_kernel(%arg0: i32, %arg1: i32, %arg2: memref<8x128xf32, #tpu.memory_space<vmem>>, %arg3: memref<1x8x128xf32, #tpu.memory_space<vmem>>) attributes {dimension_semantics = [#tpu.dimension_semantics<parallel>, #tpu.dimension_semantics<parallel>], iteration_bounds = array<i64: 1, 2>, scalar_prefetch = 0 : i64, scratch_operands = 0 : i64, tpu.core_type = #tpu.core_type<tc>, window_params = [{transform_indices = @transform_0, window_bounds = array<i64: 8, 128>}, {transform_indices = @transform_1, window_bounds = array<i64: 1, 8, 128>}]} {
    %c0 = arith.constant 0 : index
    %c0_0 = arith.constant 0 : index
    %0 = vector.load %arg2[%c0, %c0_0] : memref<8x128xf32, #tpu.memory_space<vmem>>, vector<8x128xf32>
    %c0_1 = arith.constant 0 : index
    %c0_2 = arith.constant 0 : index
    %c0_3 = arith.constant 0 : index
    %1 = vector.load %arg3[%c0_1, %c0_2, %c0_3] : memref<1x8x128xf32, #tpu.memory_space<vmem>>, vector<1x8x128xf32>
    %2 = vector.shape_cast %1 : vector<1x8x128xf32> to vector<8x128xf32>
    %3 = vector.shape_cast %0 : vector<8x128xf32> to vector<1x8x128xf32>
    tpu.vector_store %arg3[%c0_1, %c0_2, %c0_3], %3 {strides = array<i32>} : memref<1x8x128xf32, #tpu.memory_space<vmem>>, vector<1x8x128xf32>,
    return
  }
  func.func @transform_0(%arg0: i32, %arg1: i32) -> (i32, i32) {
    %c0_i32 = arith.constant 0 : i32
    %c0_i32_0 = arith.constant 0 : i32
    return %c0_i32, %arg0 : i32, i32
  }
  func.func @transform_1(%arg0: i32, %arg1: i32) -> (i32, i32, i32) {
    %c0_i32 = arith.constant 0 : i32
    %c0_i32_0 = arith.constant 0 : i32
    return %arg1, %c0_i32, %arg0 : i32, i32, i32
  }
}

</mosaic_0001>

<bundles_post_ra>
// kernel: tpu_custom_call.1
= control target key start
LH: loop header
LB: loop body
LE: loop exit
PB: predicated region body
PF: predicated region fallthrough
CT: control target
= control target key end

     0   :  { %6 = vsyncpa [#allocation3], 0  ;;  %s562_s0 = inlined_call_operand.hbm [shape: f32[8,128], index: 0, kind: input, shape index: {}]   ;;  %s563_s1 = inlined_call_operand.hbm [shape: f32[2,8,128], index: 1, kind: output, shape index: {}]  }
   0x1   :  { %7 = vsyncpa [#allocation4], 0 }
   0x2   :  { %9 = vsyncpa [#allocation4 + $0x1], 0  ;;  %s417_s6 = smov 0   ;;  %s419_s7 = smov 0  }
   0x3   :  { %s421_s8 = smov 0   ;;  %s423_s9 = smov 0  }
   0x4   :  { %s425_s10 = smov 0   ;;  %s427_s11 = smov 0  }
   0x5 LB: > { %s216_s12 = sadd.s32 4294967295, %s403_s11   ;;  %s217_s13 = sadd.s32 4294967294, %s403_s11   ;;  %s403_s11 = sphi %s427_s11, %s15_s11   ;;  %s399_s10 = sphi %s425_s10, %s581_s10   ;;  %s395_s9 = sphi %s423_s9, %s580_s9   ;;  %s391_s8 = sphi %s421_s8, %s579_s8   ;;  %s387_s7 = sphi %s419_s7, %s578_s7   ;;  %s383_s6 = sphi %s417_s6, %s577_s6  }
   0x6   : > { %s24_s14 = sadd.s32 1, %s399_s10  ;;  %s62_s15 = sadd.s32 1, %s391_s8 }
   0x7   : > { %p25_p0 = scmp.ge.s32.totalorder %s24_s14, 2  ;;  %p72_p1 = scmp.ne.s32.totalorder %s391_s8, %s387_s7 }
   0x8   : > { %p73_p2 = scmp.eq.s32.totalorder %s216_s12, 1  ;;  %p78_p3 = scmp.ne.s32.totalorder %s387_s7, %s383_s6 }
   0x9   : > { %s583_s14 = smov (%p25_p0, %s24_s14), 0  ;;  %p79_p5 = scmp.eq.s32.totalorder %s217_s13, 1 }
   0xa   : > { %p457_p4 = por %p73_p2, %p72_p1  ;;  %s57_s17 = ssub.s32 %s399_s10, %s583_s14 }
   0xb   : > { %p218_p6 = scmp.ge.s32.totalorder %s403_s11, 1  ;;  %p60_p7 = scmp.eq.s32.totalorder %s57_s17, 0 }
   0xc   : > { %s568_s16 = scalar_select %p457_p4, 1, 0 }
   0xd   : > { %p464_p8 = por %p79_p5, %p78_p3  ;;  %p86_p9 = scmp.lt.s32.totalorder %s403_s11, 3 }
   0xe   : > { %s470_s19 = scalar_select %p60_p7, %s391_s8, %s62_s15  }
   0xf   : > { %s569_s18 = scalar_select %p464_p8, 1, 0 }
  0x10   : > { %p472_p10 = pnand %p218_p6, %p86_p9  ;;  %p476_p11 = scmp.eq.s32.totalorder %s216_s12, 0 }
  0x11   : > { %s405_s22 = smov [#allocation2]   ;;  %s293_s27 = scalar_lea.hbm %s562_s0, 128 }
  0x12   : > { %s570_s20 = scalar_select %p472_p10, 1, 0 }
  0x13   : > { %s571_s21 = scalar_select %p476_p11, 1, 0 }
  0x14   : > { %p233_p12 = pneg %p472_p10  ;;  %s101_s23 = sshll.u32 %s405_s22, 4  ;;  %s102_s23 = int_to_ptr.vmem [resolvable:$true] %s101_s23 }
  0x15   : > { %p294_p0 = scmp.ne.s32.totalorder %s562_s0, %s293_s27  ;;  %p300_p5 = scmp.lt.u32.totalorder %s293_s27, %s562_s0 }
  0x16   : > { %p484_p13 = pnand %p476_p11, %p233_p12 }
  0x18   : > { %p295_p1 = pneg %p484_p13 }
  0x1a   : > { %p296_p2 = pnand %p295_p1, %p294_p0 }
  0x1c   : > { %p297_p3 = pneg %p296_p2 }
  0x1e   : > { %p302_p6 = pnand %p300_p5, %p297_p3 }
  0x20   : > { %305 = shalt.err (!%p302_p6)
}
  0x21   : > { %s306_s3 = scalar_lea.vmem %s102_s23, 128  ;;  %p314_p8 = scmp.lt.s32.totalorder %s102_s23, %s102_s23 }
  0x22   : > { %p307_p7 = scmp.ne.s32.totalorder %s102_s23, %s306_s3  ;;  %p315_p4 = scmp.lt.s32.totalorder %s306_s3, %s306_s3 }
  0x24   : > { %p309_p9 = pnand %p307_p7, %p295_p1  ;;  %p316_p11 = por %p315_p4, %p314_p8 }
  0x26   : > { %p310_p12 = pneg %p309_p9 }
  0x28   : > { %p317_p10 = pnand %p316_p11, %p310_p12 }
  0x2a   : > { %320 = shalt.err (!%p317_p10)
}
  0x2b   : > { %236 = dma.hbm_to_vmem [thread:$0]  (!%p484_p13), %s562_s0, 128, %s102_s23, [#allocation3]  }
  0x2c   : > { %p573_p0 = scmp.ne.s32.totalorder %s570_s20, 0 }
  0x2d   : > { %p574_p2 = scmp.ne.s32.totalorder (!%p573_p0), %s571_s21, 0 }
  0x2e   : > { %114 = sbr.rel (%p573_p0) target bundleno = 80 (0x50), region = 24 }
  0x35   : > { %374 = dma.done.wait (%p574_p2), [#allocation3], 128  }
  0x36   : > { %376 = vsyncadd (%p574_p2), [#allocation3], 4294967168  ;;  %s126_s12 = sand.u32 1, %s387_s7   ;;  %s224_s22 = sshll.u32 %s395_s9, 7  ;;  %v129_v0 = vld [vmem:[#allocation2] sm:$0xff] }
  0x37   : > { %s222_s13 = sshll.u32 %s126_s12, 3  ;;  %s517_s20 = scalar_lea.hbm %s563_s1, %s224_s22 }
  0x38   : > { %s128_s15 = scalar_lea.vmem [#allocation5], %s222_s13  ;;  %s132_s21 = scalar_lea.sflag [#allocation4], %s126_s12 }
  0x39   : > { %s146_s17 = sshll.u32 %s128_s15, 4  ;;  %130 = vst [vmem:[%s128_s15] sm:$0xff] %v129_v0  ;;  %p575_p8 = scmp.ne.s32.totalorder %s568_s16, 0  ;;  %s512_s17 = int_to_ptr.vmem [resolvable:$true] %s146_s17 }
  0x3a   : > { %s321_s25 = scalar_lea.vmem %s512_s17, 128  ;;  %s406_s26 = smov [#allocation5]  }
  0x3b   : > { %p322_p4 = scmp.ne.s32.totalorder %s512_s17, %s321_s25  ;;  %s325_s9 = sshll.u32 %s406_s26, 4  ;;  %s326_s9 = int_to_ptr.vmem [resolvable:$false] %s325_s9 }
  0x3c   : > { %s327_s27 = scalar_lea.vmem %s326_s9, 256  ;;  %p328_p13 = scmp.lt.s32.totalorder %s512_s17, %s326_s9 }
  0x3d   : > { %p323_p10 = pnand %p322_p4, %p575_p8  ;;  %p329_p1 = scmp.lt.s32.totalorder %s327_s27, %s321_s25 }
  0x3f   : > { %p324_p11 = pneg %p323_p10  ;;  %p330_p3 = por %p329_p1, %p328_p13 }
  0x41   : > { %p331_p5 = pnand %p330_p3, %p324_p11 }
  0x43   : > { %334 = shalt.err (!%p331_p5)
}
  0x44   : > { %s335_s28 = scalar_lea.hbm %s517_s20, 128  ;;  %s339_s2 = scalar_lea.hbm %s563_s1, 256 }
  0x45   : > { %p336_p6 = scmp.ne.s32.totalorder %s517_s20, %s335_s28  ;;  %p340_p12 = scmp.lt.u32.totalorder %s517_s20, %s563_s1 }
  0x46   : > { %p341_p0 = scmp.lt.u32.totalorder %s339_s2, %s335_s28  ;;  %p343_p4 = scmp.lt.u32.totalorder %s335_s28, %s517_s20 }
  0x47   : > { %p337_p7 = pnand %p336_p6, %p575_p8 }
  0x48   : > { %p342_p2 = por %p341_p0, %p340_p12 }
  0x49   : > { %p338_p9 = pneg %p337_p7 }
  0x4a   : > { %p344_p10 = por %p343_p4, %p342_p2 }
  0x4c   : > { %p345_p11 = pnand %p344_p10, %p338_p9 }
  0x4e   : > { %348 = shalt.err (!%p345_p11)
}
  0x4f   : > { %231 = dma.vmem_to_hbm [thread:$0]  (%p575_p8), %s512_s17, 128, %s517_s20, %s132_s21  }
  0x50 PF: > { %p243_p13 = scmp.ge.s32.totalorder %s403_s11, 2  ;;  %s158_s5 = sand.u32 1, %s383_s6  }
  0x51   : > { %p576_p1 = scmp.ne.s32.totalorder %s569_s18, 0  ;;  %s159_s12 = scalar_lea.sflag [#allocation4], %s158_s5 }
  0x53   : > { %p238_p3 = pnand %p243_p13, %p576_p1 }
  0x55   : > { %378 = dma.done.wait (!%p238_p3), %s159_s12, 128  }
  0x56   : > { %380 = vsyncadd (!%p238_p3), %s159_s12, 4294967168  ;;  %s15_s11 = sadd.s32 1, %s403_s11   ;;  %s577_s6 = smov %s387_s7 }
  0x57   : > { %p12_p5 = scmp.ge.s32.totalorder %s15_s11, 4   ;;  %s578_s7 = smov %s391_s8 }
  0x58   : > { %s579_s8 = smov %s470_s19  ;;  %s580_s9 = smov %s399_s10 }
  0x59   : > { %s581_s10 = smov %s583_s14  ;;  %14 = sbr.rel (!%p12_p5) target bundleno = 5 (0x5), region = 62 }
  0x60   :  { %164 = vsyncpa [#allocation3], 1 }
  0x61   :  { %166 = vsyncpa [#allocation3 + $0x1], 1 }
  0x62   :  { %167 = vsyncpa [#allocation4], 1 }
  0x63   :  { %169 = vsyncpa [#allocation4 + $0x1], 1 }

</bundles_post_ra>
